<compile_context>
chip_gen: v5e
topology: v5e:2x2
jax: 0.10.0
libtpu: 0.0.40
codegen_flags: <defaults>
</compile_context>

<pallas_src>
import functools

import jax
import jax.numpy as jnp
from jax.experimental import pallas as pl
from jax.experimental.pallas import tpu as pltpu


def _round_up(x, m):
    return ((x + m - 1) // m) * m


def _baln_kernel(x_ref, batch_ref, w_ref, b_ref, o_ref, *, d_out, d_out_pad):
    # ---- LayerNorm over the *real* last-dim features (no affine, eps=1e-5) ----
    x = x_ref[...].astype(jnp.float32)                      # (tm, d_out_pad)
    inv_d = jnp.float32(1.0 / d_out)
    if d_out == d_out_pad:
        mu = jnp.mean(x, axis=-1, keepdims=True)
        xc = x - mu
        var = jnp.mean(xc * xc, axis=-1, keepdims=True)
    else:
        # Padded columns are zeroed in the wrapper; jnp.where keeps them (and
        # any junk) out of the statistics.
        col = jax.lax.broadcasted_iota(jnp.int32, x.shape, 1)
        mask = col < d_out
        xz = jnp.where(mask, x, 0.0)
        mu = jnp.sum(xz, axis=-1, keepdims=True) * inv_d
        xc = jnp.where(mask, x - mu, 0.0)
        var = jnp.sum(xc * xc, axis=-1, keepdims=True) * inv_d
    xn = xc * jax.lax.rsqrt(var + 1e-5)                     # padded cols -> 0

    # ---- fused mean/scale linear layer on the MXU ----
    b = batch_ref[...].astype(jnp.float32)                  # (tm, d_in)
    ms = jnp.dot(b, w_ref[...], preferred_element_type=jnp.float32) + b_ref[...]
    mean = ms[:, :d_out_pad]                                # 128-aligned slices
    scale = jnp.exp(ms[:, d_out_pad:])                      # padded cols: exp(0)=1

    # ---- modulate + ReLU ----
    y = xn * scale + mean
    o_ref[...] = jnp.maximum(y, 0.0).astype(o_ref.dtype)


def batch_aware_layernorm(x, batch, w_mean, b_mean, w_scale, b_scale, *, tm=1024):
    """x: (N, D_out), batch: (N, D_in), w_*: (D_in, D_out), b_*: (D_out,)."""
    N, d_out = x.shape
    d_in = batch.shape[-1]

    d_out_pad = _round_up(d_out, 128)        # lane-dense output & matmul columns
    two_d = 2 * d_out_pad

    # ---- adaptive row tile: as big as VMEM comfortably allows (mem-bound) ----
    # per-row VMEM estimate: x/out double-buffered (4*d_out_pad) + batch (d_in)
    # + in-kernel temporaries (~3*d_out_pad), all f32.
    row_bytes = 4 * (7 * d_out_pad + d_in)
    tm_cap = max(8, ((24 << 20) // row_bytes) // 8 * 8)
    tm_eff = max(8, (min(tm, tm_cap, _round_up(N, 8)) // 8) * 8)

    f32 = jnp.float32
    # Fused weight (d_in, 2*d_out_pad): [W_mean | W_scale], zero padded columns.
    w_fused = jnp.zeros((d_in, two_d), f32)
    w_fused = w_fused.at[:, :d_out].set(w_mean.astype(f32))
    w_fused = w_fused.at[:, d_out_pad:d_out_pad + d_out].set(w_scale.astype(f32))
    b_fused = jnp.zeros((1, two_d), f32)
    b_fused = b_fused.at[0, :d_out].set(b_mean.astype(f32))
    b_fused = b_fused.at[0, d_out_pad:d_out_pad + d_out].set(b_scale.astype(f32))

    # Only pad x columns when d_out is not lane-aligned (keeps the common
    # aligned case copy-free).  Rows are never padded: partial last block is
    # handled by the pipeline (OOB reads stay in rows whose stores are masked).
    if d_out_pad != d_out:
        x_in = jnp.pad(x, ((0, 0), (0, d_out_pad - d_out)))
    else:
        x_in = x

    grid = (pl.cdiv(N, tm_eff),)

    vmem_need = tm_eff * row_bytes + 8 * d_in * two_d
    vmem_limit = int(min(max(32 << 20, vmem_need + (8 << 20)), 112 << 20))

    kernel = functools.partial(_baln_kernel, d_out=d_out, d_out_pad=d_out_pad)

    out_p = pl.pallas_call(
        kernel,
        out_shape=jax.ShapeDtypeStruct((N, d_out_pad), x.dtype),
        grid_spec=pltpu.PrefetchScalarGridSpec(
            num_scalar_prefetch=0,
            grid=grid,
            in_specs=[
                pl.BlockSpec((tm_eff, d_out_pad), lambda i: (i, 0)),  # x rows
                pl.BlockSpec((tm_eff, d_in), lambda i: (i, 0)),       # batch rows
                pl.BlockSpec((d_in, two_d), lambda i: (0, 0)),        # fused W (resident)
                pl.BlockSpec((1, two_d), lambda i: (0, 0)),           # fused bias
            ],
            out_specs=pl.BlockSpec((tm_eff, d_out_pad), lambda i: (i, 0)),
        ),
        compiler_params=pltpu.CompilerParams(
            dimension_semantics=("parallel",),
            vmem_limit_bytes=vmem_limit,
        ),
    )(x_in, batch, w_fused, b_fused)

    if d_out_pad != d_out:
        return out_p[:, :d_out]
    return out_p


def _reference(x, batch, w_mean, b_mean, w_scale, b_scale):
    mu = jnp.mean(x, axis=-1, keepdims=True)
    var = jnp.mean((x - mu) ** 2, axis=-1, keepdims=True)
    xn = (x - mu) / jnp.sqrt(var + 1e-5)
    mean = batch @ w_mean + b_mean
    scale = jnp.exp(batch @ w_scale + b_scale)
    return jnp.maximum(xn * scale + mean, 0.0)


if __name__ == "__main__":
    # Small shapes consistent with the module: N tokens, input_dim -> output_dim.
    N, input_dim, output_dim = 8, 16, 32

    key = jax.random.PRNGKey(0)
    kx, kb, kwm, kbm, kws, kbs = jax.random.split(key, 6)

    x = jax.random.normal(kx, (N, output_dim), dtype=jnp.float32)
    batch = jax.random.normal(kb, (N, input_dim), dtype=jnp.float32)

    # Deterministic nn.Linear-style init: U(-1/sqrt(fan_in), 1/sqrt(fan_in)).
    bound = 1.0 / (input_dim ** 0.5)
    w_mean = jax.random.uniform(kwm, (input_dim, output_dim), jnp.float32, -bound, bound)
    b_mean = jax.random.uniform(kbm, (output_dim,), jnp.float32, -bound, bound)
    w_scale = jax.random.uniform(kws, (input_dim, output_dim), jnp.float32, -bound, bound)
    b_scale = jax.random.uniform(kbs, (output_dim,), jnp.float32, -bound, bound)

    out = batch_aware_layernorm(x, batch, w_mean, b_mean, w_scale, b_scale)
    out = jax.block_until_ready(out)
    ref = _reference(x, batch, w_mean, b_mean, w_scale, b_scale)
    assert out.shape == (N, output_dim)
    assert jnp.allclose(out, ref, atol=1e-5, rtol=1e-5), "mismatch vs reference"

    # Ragged N (partial last block, padded d_out path).
    N2 = 300
    k2x, k2b = jax.random.split(jax.random.PRNGKey(1))
    x2 = jax.random.normal(k2x, (N2, output_dim), dtype=jnp.float32)
    batch2 = jax.random.normal(k2b, (N2, input_dim), dtype=jnp.float32)
    out2 = jax.block_until_ready(
        batch_aware_layernorm(x2, batch2, w_mean, b_mean, w_scale, b_scale)
    )
    ref2 = _reference(x2, batch2, w_mean, b_mean, w_scale, b_scale)
    assert out2.shape == (N2, output_dim)
    assert jnp.allclose(out2, ref2, atol=1e-5, rtol=1e-5), "mismatch vs reference (ragged)"

    # Lane-aligned d_out (zero-copy wrapper path, larger tile).
    N3, d_in3, d_out3 = 512, 64, 256
    k3x, k3b, k3wm, k3bm, k3ws, k3bs = jax.random.split(jax.random.PRNGKey(2), 6)
    bound3 = 1.0 / (d_in3 ** 0.5)
    x3 = jax.random.normal(k3x, (N3, d_out3), dtype=jnp.float32)
    batch3 = jax.random.normal(k3b, (N3, d_in3), dtype=jnp.float32)
    w_mean3 = jax.random.uniform(k3wm, (d_in3, d_out3), jnp.float32, -bound3, bound3)
    b_mean3 = jax.random.uniform(k3bm, (d_out3,), jnp.float32, -bound3, bound3)
    w_scale3 = jax.random.uniform(k3ws, (d_in3, d_out3), jnp.float32, -bound3, bound3)
    b_scale3 = jax.random.uniform(k3bs, (d_out3,), jnp.float32, -bound3, bound3)
    out3 = jax.block_until_ready(
        batch_aware_layernorm(x3, batch3, w_mean3, b_mean3, w_scale3, b_scale3)
    )
    ref3 = _reference(x3, batch3, w_mean3, b_mean3, w_scale3, b_scale3)
    assert out3.shape == (N3, d_out3)
    assert jnp.allclose(out3, ref3, atol=1e-4, rtol=1e-4), "mismatch vs reference (aligned)"

    print("KERNEL_OK")
</pallas_src>

<mosaic_0001>
module attributes {stable_mosaic.version = 11 : i64} {
  func.func @_baln_kernel(%arg0: i32, %arg1: memref<8x128xf32, #tpu.memory_space<vmem>>, %arg2: memref<8x16xf32, #tpu.memory_space<vmem>>, %arg3: memref<16x256xf32, #tpu.memory_space<vmem>>, %arg4: memref<1x256xf32, #tpu.memory_space<vmem>>, %arg5: memref<8x128xf32, #tpu.memory_space<vmem>>) attributes {dimension_semantics = [#tpu.dimension_semantics<parallel>], iteration_bounds = array<i64: 1>, scalar_prefetch = 0 : i64, scratch_operands = 0 : i64, tpu.core_type = #tpu.core_type<tc>, window_params = [{transform_indices = @transform_0, window_bounds = array<i64: 8, 128>}, {transform_indices = @transform_1, window_bounds = array<i64: 8, 16>}, {pipeline_mode = #tpu.pipeline_mode<synchronous>, transform_indices = @transform_2, window_bounds = array<i64: 16, 256>}, {pipeline_mode = #tpu.pipeline_mode<synchronous>, transform_indices = @transform_3, window_bounds = array<i64: 1, 256>}, {transform_indices = @transform_4, window_bounds = array<i64: 8, 128>}]} {
    %c0 = arith.constant 0 : index
    %c0_0 = arith.constant 0 : index
    %0 = vector.load %arg1[%c0, %c0_0] : memref<8x128xf32, #tpu.memory_space<vmem>>, vector<8x128xf32>
    %1 = tpu.iota {dimensions = array<i32: 1>} : vector<8x128xi32>
    %c32_i32 = arith.constant 32 : i32
    %2 = vector.broadcast %c32_i32 : i32 to vector<8x128xi32>
    %3 = arith.cmpi slt, %1, %2 : vector<8x128xi32>
    %cst = arith.constant 0.000000e+00 : f32
    %4 = vector.broadcast %cst : f32 to vector<8x128xf32>
    %5 = arith.select %3, %0, %4 : vector<8x128xi1>, vector<8x128xf32>
    %cst_1 = arith.constant dense<0.000000e+00> : vector<8xf32>
    %6 = vector.multi_reduction <add>, %5, %cst_1 [1] : vector<8x128xf32> to vector<8xf32>
    %7 = vector.shape_cast %6 : vector<8xf32> to vector<8x1xf32>
    %cst_2 = arith.constant 3.125000e-02 : f32
    %8 = vector.broadcast %cst_2 : f32 to vector<8x1xf32>
    %9 = arith.mulf %7, %8 : vector<8x1xf32>
    %10 = vector.broadcast %9 : vector<8x1xf32> to vector<8x128xf32>
    %11 = arith.subf %0, %10 : vector<8x128xf32>
    %cst_3 = arith.constant 0.000000e+00 : f32
    %12 = vector.broadcast %cst_3 : f32 to vector<8x128xf32>
    %13 = arith.select %3, %11, %12 : vector<8x128xi1>, vector<8x128xf32>
    %14 = arith.mulf %13, %13 : vector<8x128xf32>
    %cst_4 = arith.constant dense<0.000000e+00> : vector<8xf32>
    %15 = vector.multi_reduction <add>, %14, %cst_4 [1] : vector<8x128xf32> to vector<8xf32>
    %16 = vector.shape_cast %15 : vector<8xf32> to vector<8x1xf32>
    %cst_5 = arith.constant 3.125000e-02 : f32
    %17 = vector.broadcast %cst_5 : f32 to vector<8x1xf32>
    %18 = arith.mulf %16, %17 : vector<8x1xf32>
    %cst_6 = arith.constant 9.99999974E-6 : f32
    %19 = vector.broadcast %cst_6 : f32 to vector<8x1xf32>
    %20 = arith.addf %18, %19 : vector<8x1xf32>
    %21 = math.rsqrt %20 : vector<8x1xf32>
    %22 = vector.broadcast %21 : vector<8x1xf32> to vector<8x128xf32>
    %23 = arith.mulf %13, %22 : vector<8x128xf32>
    %c0_7 = arith.constant 0 : index
    %c0_8 = arith.constant 0 : index
    %24 = vector.load %arg2[%c0_7, %c0_8] : memref<8x16xf32, #tpu.memory_space<vmem>>, vector<8x16xf32>
    %c0_9 = arith.constant 0 : index
    %c0_10 = arith.constant 0 : index
    %25 = vector.load %arg3[%c0_9, %c0_10] : memref<16x256xf32, #tpu.memory_space<vmem>>, vector<16x256xf32>
    %cst_11 = arith.constant dense<0.000000e+00> : vector<8x256xf32>
    %26 = tpu.matmul %24, %25, %cst_11 {dimension_numbers = #tpu.dot_dimension_numbers<[1], [0], [0], [1], [0, 0, 1, 1], [], []>} : vector<8x16xf32>, vector<16x256xf32>, vector<8x256xf32> -> vector<8x256xf32>
    %c0_12 = arith.constant 0 : index
    %c0_13 = arith.constant 0 : index
    %27 = vector.load %arg4[%c0_12, %c0_13] : memref<1x256xf32, #tpu.memory_space<vmem>>, vector<1x256xf32>
    %28 = vector.broadcast %27 : vector<1x256xf32> to vector<8x256xf32>
    %29 = arith.addf %26, %28 : vector<8x256xf32>
    %30 = vector.extract_strided_slice %29 {offsets = [0, 0], sizes = [8, 128], strides = [1, 1]} : vector<8x256xf32> to vector<8x128xf32>
    %31 = vector.extract_strided_slice %29 {offsets = [0, 128], sizes = [8, 128], strides = [1, 1]} : vector<8x256xf32> to vector<8x128xf32>
    %32 = math.exp %31 : vector<8x128xf32>
    %33 = arith.mulf %23, %32 : vector<8x128xf32>
    %34 = arith.addf %33, %30 : vector<8x128xf32>
    %cst_14 = arith.constant 0.000000e+00 : f32
    %35 = vector.broadcast %cst_14 : f32 to vector<8x128xf32>
    %36 = arith.maximumf %34, %35 : vector<8x128xf32>
    %c0_15 = arith.constant 0 : index
    %c0_16 = arith.constant 0 : index
    %37 = vector.load %arg5[%c0_15, %c0_16] : memref<8x128xf32, #tpu.memory_space<vmem>>, vector<8x128xf32>
    tpu.vector_store %arg5[%c0_15, %c0_16], %36 {strides = array<i32>} : memref<8x128xf32, #tpu.memory_space<vmem>>, vector<8x128xf32>,
    return
  }
  func.func @transform_0(%arg0: i32) -> (i32, i32) {
    %c0_i32 = arith.constant 0 : i32
    %c0_i32_0 = arith.constant 0 : i32
    return %arg0, %c0_i32 : i32, i32
  }
  func.func @transform_1(%arg0: i32) -> (i32, i32) {
    %c0_i32 = arith.constant 0 : i32
    %c0_i32_0 = arith.constant 0 : i32
    return %arg0, %c0_i32 : i32, i32
  }
  func.func @transform_2(%arg0: i32) -> (i32, i32) {
    %c0_i32 = arith.constant 0 : i32
    %c0_i32_0 = arith.constant 0 : i32
    %c0_i32_1 = arith.constant 0 : i32
    return %c0_i32, %c0_i32_0 : i32, i32
  }
  func.func @transform_3(%arg0: i32) -> (i32, i32) {
    %c0_i32 = arith.constant 0 : i32
    %c0_i32_0 = arith.constant 0 : i32
    %c0_i32_1 = arith.constant 0 : i32
    return %c0_i32, %c0_i32_0 : i32, i32
  }
  func.func @transform_4(%arg0: i32) -> (i32, i32) {
    %c0_i32 = arith.constant 0 : i32
    %c0_i32_0 = arith.constant 0 : i32
    return %arg0, %c0_i32 : i32, i32
  }
}

</mosaic_0001>

<bundles_post_ra>
// kernel: tpu_custom_call.1
= control target key start
LH: loop header
LB: loop body
LE: loop exit
PB: predicated region body
PF: predicated region fallthrough
CT: control target
= control target key end

     0   :  { %9 = vsyncpa [#allocation3], 0  ;;  %s328_s0 = inlined_call_operand.hbm [shape: f32[8,128], index: 0, kind: input, shape index: {}]   ;;  %s329_s1 = inlined_call_operand.hbm [shape: f32[8,16], index: 1, kind: input, shape index: {}]   ;;  %s330_s2 = inlined_call_operand.hbm [shape: f32[16,256], index: 2, kind: input, shape index: {}]   ;;  %s331_s3 = inlined_call_operand.vmem [shape: f32[1,256], index: 3, kind: input, shape index: {}]   ;;  %s332_s4 = inlined_call_operand.hbm [shape: f32[8,128], index: 4, kind: output, shape index: {}]  }
   0x1   :  { %10 = vsyncpa [#allocation6], 0  ;;  %s28_s17 = sshll.u32 %s329_s1, 4  ;;  %s29_s17 = int_to_ptr.hbm [resolvable:$true] %s28_s17 }
   0x2   :  { %11 = vsyncpa [#allocation4], 0  ;;  %s280_s18 = smov [#allocation5]   ;;  %s17_s22 = sshll.u32 %s328_s0, 4  ;;  %s18_s22 = int_to_ptr.hbm [resolvable:$true] %s17_s22 }
   0x3   :  { %s30_s19 = sshll.u32 %s280_s18, 4  ;;  %s281_s23 = smov [#allocation2]   ;;  %s31_s19 = int_to_ptr.vmem [resolvable:$true] %s30_s19 }
   0x4   :  { %33 = dma.hbm_to_vmem [thread:$0]  %s29_s17, 128, %s31_s19, [#allocation6]  }
   0x5   :  { %s19_s24 = sshll.u32 %s281_s23, 4  ;;  %s38_s27 = sshll.u32 %s330_s2, 4  ;;  %s20_s24 = int_to_ptr.vmem [resolvable:$true] %s19_s24  ;;  %s39_s27 = int_to_ptr.hbm [resolvable:$true] %s38_s27 }
   0x6   :  { %22 = dma.hbm_to_vmem [thread:$0]  %s18_s22, 128, %s20_s24, [#allocation3]  }
   0x7   :  { %s282_s1 = smov [#allocation7]   ;;  %s283_s29 = smov 256  }
   0x8   :  { %s40_s28 = sshll.u32 %s282_s1, 4  ;;  %s284_s30 = smov 16   ;;  %s41_s28 = int_to_ptr.vmem [resolvable:$true] %s40_s28 }
   0x9   :  { %46 = dma.hbm_to_vmem [thread:$0]  %s39_s27, 512, %s41_s28, [#allocation6], %s283_s29, %s283_s29, %s284_s30  }
   0xa   :  { %274 = dma.done.wait [#allocation3], 128  }
   0xb   :  { %275 = vsyncadd [#allocation3], 4294967168 }
   0xc   :  { %276 = dma.done.wait [#allocation6], 640  }
   0xd   :  { %277 = vsyncadd [#allocation6], 4294966656  ;;  %v62_v0 = vlaneseq  ;;  %v61_v2 = vld [vmem:[#allocation2] sm:$0xff]  ;;  %v91_v4 = vld [vmem:[#allocation7 + $0x18] sm:$0xff]  ;;  %vm98_vm1 = vcmask 130048   ;;  %s155_s8 = sshll.u32 %s332_s4, 4  ;;  %s156_s8 = int_to_ptr.hbm [resolvable:$true] %s155_s8 }
   0xe   :  { %136 = vmatpush.msra.mxu1 %v91_v4  ;;  %v89_v5 = vld [vmem:[#allocation7 + $0x8] sm:$0xff]  ;;  %v87_v6 = vld [vmem:[#allocation5] sm:$0xff]  ;;  %v90_v7 = vld [vmem:[#allocation7 + $0x10] sm:$0xff] }
   0xf   :  { %v63_v1 = vand.u32 127, %v62_v0  ;;  %116 = vmatpush.msra.mxu0 %v90_v7  ;;  %v88_v8 = vld [vmem:[#allocation7] sm:$0xff]  ;;  %v92_v16 = vld [vmem:[%s331_s3] sm:$0x3]  ;;  %s285_s3 = smov [#allocation8]  }
  0x10   :  { %137 = vmatpush.msra.mxu1 %v89_v5  ;;  %v95_v18 = vperm.slane %v92_v16, 1  ;;  %v94_v27 = vperm.slane %v92_v16, 0  ;;  %s153_s5 = sshll.u32 %s285_s3, 4  ;;  %s154_s5 = int_to_ptr.vmem [resolvable:$true] %s153_s5 }
  0x11   :  { %vm64_vm0 = vcmp.lt.s32.totalorder %v63_v1, 32  ;;  %167 = vmatmul.msk.f32.vlgmr.msra.gmra.mxu1 %vm98_vm1, %v87_v6  ;;  %117 = vmatpush.msra.mxu0 %v88_v8 }
  0x12   :  { %v65_v3 = vsel %vm64_vm0, %v61_v2, 0.0  ;;  %166 = vmatmul.msk.f32.vlgmr.msra.gmra.mxu0 %vm98_vm1, %v87_v6 }
  0x13   :  { %66 = vadd.xlane.f32.xlu0 %v65_v3 }
  0x86   :  { %v67_v9 = vpop.xlane.xlu0 %66 }
  0x87   :  { %v68_v10 = vmul.f32 0.03125, %v67_v9 }
  0x89   :  { %v69_v11 = vsub.f32 %v61_v2, %v68_v10 }
  0x8b   :  { %v70_v12 = vsel %vm64_vm0, %v69_v11, 0.0 }
  0x8c   :  { %v71_v13 = vmul.f32 %v70_v12, %v70_v12 }
  0x8e   :  { %72 = vadd.xlane.f32.xlu0 %v71_v13  ;;  %v139_v19 = vpop.f32.mrf.mxu1 }
  0x8f   :  { %v140_v20 = vadd.f32 %v139_v19, %v95_v18  ;;  %v119_v29 = vpop.f32.mrf.mxu0 }
  0x90   :  { %v120_v33 = vadd.f32 %v119_v29, %v94_v27 }
  0x91   :  { %v142_v23 = vmul.f32 1.442695, %v140_v20 }
 0x101   :  { %v73_v14 = vpop.xlane.xlu0 %72 }
 0x102   :  { %v74_v15 = vmul.f32 0.03125, %v73_v14 }
 0x104   :  { %v75_v17 = vadd.f32 1e-05, %v74_v15 }
 0x106   :  { %174 = vrsqrt.f32 %v75_v17  ;;  %vm82_vm3 = vweird.f32 %v75_v17 }
 0x107   :  { %176 = vpow2.f32 %v142_v23 }
 0x10c   :  { %v175_v21 = vpop.eup %174 }
 0x10d   :  { %v77_v22 = vmul.f32 %v175_v21, %v75_v17  ;;  %vm83_vm2 = vweird.f32 %v175_v21  ;;  %v177_v30 = vpop.eup %176 }
 0x10e   :  { %vm84_vm4 = vmor %vm82_vm3, %vm83_vm2 }
 0x10f   :  { %v78_v24 = vmul.f32 %v175_v21, %v77_v22 }
 0x111   :  { %v79_v25 = vmul.f32 0.5, %v78_v24 }
 0x113   :  { %v80_v26 = vsub.f32 1.5, %v79_v25 }
 0x115   :  { %v81_v28 = vmul.f32 %v175_v21, %v80_v26 }
 0x117   :  { %v85_v31 = vsel %vm84_vm4, %v175_v21, %v81_v28 }
 0x118   :  { %v86_v32 = vmul.f32 %v85_v31, %v70_v12 }
 0x11a   :  { %v144_v34 = vmul.f32 %v177_v30, %v86_v32 }
 0x11c   :  { %v145_v35 = vadd.f32 %v144_v34, %v120_v33 }
 0x11e   :  { %v146_v36 = vmax.f32 %v145_v35, 0.0 }
 0x120   :  { %147 = vst [vmem:[#allocation8] sm:$0xff] %v146_v36 }
 0x121   :  { %158 = dma.vmem_to_hbm [thread:$0]  %s154_s5, 128, %s156_s8, [#allocation4]  }
 0x122   :  { %278 = dma.done.wait [#allocation4], 128  }
 0x123   :  { %279 = vsyncadd [#allocation4], 4294967168 }
 0x124   :  { %163 = vsyncpa [#allocation3], 1 }
 0x125   :  { %164 = vsyncpa [#allocation6], 1 }
 0x126   :  { %165 = vsyncpa [#allocation4], 1 }

</bundles_post_ra>
